<compile_context>
chip_gen: v6e
topology: v6e:2x2x1
jax: 0.10.0
libtpu: 0.0.40
codegen_flags: <defaults>
</compile_context>

<pallas_src>
import functools

import jax
import jax.numpy as jnp
from jax.experimental import pallas as pl
from jax.experimental.pallas import tpu as pltpu


# ----------------------------------------------------------------------------
# Pallas kernel (single fused launch)
# ----------------------------------------------------------------------------
def _fused_kernel(params_ref, img_ref, wy_ref, wxt_ref, mask_ref, ny_ref,
                  nxt_ref, img_out_ref, mask_out_ref, *, channels_per_block):
    """Normalize + bilinear-resize a block of bands and nearest-resize the mask.

    params_ref   : SMEM (4, C)   rows = [scale, shift, lo, hi]  (scalar prefetch)
    img_ref      : VMEM (CB, H, W) f32
    wy_ref       : VMEM (S, H)   bf16 bilinear row-interp matrix (align_corners)
    wxt_ref      : VMEM (W, S)   bf16 bilinear col-interp matrix, transposed
    mask_ref     : VMEM (H, W)   f32
    ny_ref       : VMEM (S, H)   bf16 nearest one-hot row matrix
    nxt_ref      : VMEM (W, S)   bf16 nearest one-hot col matrix, transposed
    img_out_ref  : VMEM (CB, S, S) f32
    mask_out_ref : VMEM (1, S, S)  f32
    """
    g = pl.program_id(0)
    wy = wy_ref[...]          # bf16, loaded once per step, reused per channel
    wxt = wxt_ref[...]

    for j in range(channels_per_block):          # static, small trip count
        c = g * channels_per_block + j
        scale = params_ref[0, c]
        shift = params_ref[1, c]
        lo = params_ref[2, c]
        hi = params_ref[3, c]
        # clamp(img, qmin, qmax) -> (x - (mean-2std))/(4std) -> clamp [0,1]
        # folded into ONE fused multiply-add + ONE clip (no per-element divide).
        x = jnp.clip(img_ref[j] * scale - shift, lo, hi)
        # bilinear resize (align_corners=True) as Wy @ x @ Wx^T on the MXU
        # (bf16 operands, f32 accumulation: ~1e-3 abs error, fine for augs).
        tmp = jnp.dot(wy, x.astype(jnp.bfloat16),
                      preferred_element_type=jnp.float32)
        img_out_ref[j] = jnp.dot(tmp.astype(jnp.bfloat16), wxt,
                                 preferred_element_type=jnp.float32)

    # Nearest-neighbour mask resize, fused into the same launch.  When the
    # channel axis is a multi-step "parallel" grid this tiny pair of one-hot
    # matmuls is recomputed per step so every grid step owns its own output
    # block (revisit-free under megacore) — still far cheaper than a second
    # pallas_call.  Labels are small integers, exactly representable in bf16
    # -> one-hot matmul is exact.
    m = mask_ref[...].astype(jnp.bfloat16)
    tmpm = jnp.dot(ny_ref[...], m, preferred_element_type=jnp.float32)
    mask_out_ref[0] = jnp.dot(tmpm.astype(jnp.bfloat16), nxt_ref[...],
                              preferred_element_type=jnp.float32)


# ----------------------------------------------------------------------------
# Interpolation matrices / helpers
# ----------------------------------------------------------------------------
def _bilinear_matrix(out_size: int, in_size: int) -> jnp.ndarray:
    """Row-interpolation matrix for bilinear resize with align_corners=True."""
    if out_size == 1:
        src = jnp.zeros((1,), jnp.float32)
    else:
        src = jnp.arange(out_size, dtype=jnp.float32) * (in_size - 1) / (out_size - 1)
    i0 = jnp.clip(jnp.floor(src).astype(jnp.int32), 0, in_size - 1)
    i1 = jnp.clip(i0 + 1, 0, in_size - 1)
    w1 = src - i0.astype(jnp.float32)
    w0 = 1.0 - w1
    rows = jnp.arange(out_size)
    m = jnp.zeros((out_size, in_size), jnp.float32)
    m = m.at[rows, i0].add(w0)
    m = m.at[rows, i1].add(w1)
    return m


def _nearest_matrix(out_size: int, in_size: int) -> jnp.ndarray:
    """One-hot matrix implementing torch/kornia legacy 'nearest' resize."""
    # TODO(synk): this is legacy 'nearest' (floor(i*in/out)), not 'nearest-exact'.
    src = jnp.floor(
        jnp.arange(out_size, dtype=jnp.float32) * (in_size / out_size)
    ).astype(jnp.int32)
    src = jnp.clip(src, 0, in_size - 1)
    m = jnp.zeros((out_size, in_size), jnp.float32)
    m = m.at[jnp.arange(out_size), src].set(1.0)
    return m


def _default_channels_per_block(num_channels: int) -> int:
    """Single-TC chips (v5e/v6e): one big block.  Multi-TC (v7x): per-channel grid."""
    try:
        kind = jax.devices()[0].device_kind.lower()
    except Exception:  # pragma: no cover
        kind = ""
    single_tc = ("lite" in kind) or ("v5e" in kind) or ("v6e" in kind)
    return num_channels if single_tc else 1


# ----------------------------------------------------------------------------
# Wrapper
# ----------------------------------------------------------------------------
@functools.partial(jax.jit, static_argnames=("modality", "size", "channels_per_block"))
def _seg_aug_impl(image, mask, mean, std, *, modality, size, channels_per_block):
    C, H, W = image.shape
    S = size
    cb = channels_per_block
    n_blocks = C // cb

    image = image.astype(jnp.float32)
    mask = mask.astype(jnp.float32)
    mean = jnp.asarray(mean, jnp.float32)
    std = jnp.asarray(std, jnp.float32)

    # Fold normalize into one FMA + clip:  x*scale - shift, clipped to [lo, hi].
    min_v = mean - 2.0 * std
    denom = jnp.maximum(4.0 * std, jnp.finfo(jnp.float32).tiny)  # guard std == 0
    scale = 1.0 / denom
    shift = min_v * scale

    if modality == "s1":
        # TODO(synk): jnp.quantile sorts the full raster in XLA before the kernel;
        # for large tiles replace with a fused histogram/min-max Pallas pass.
        flat = image.reshape(C, -1)
        max_q = jnp.quantile(flat, 0.99, axis=1)
        min_q = jnp.quantile(flat, 0.01, axis=1)
        # Pre-clipping both bounds to [0,1] makes the composed clamp exact even
        # when the quantile window maps entirely outside [0,1].
        lo = jnp.clip((min_q - min_v) * scale, 0.0, 1.0)
        hi = jnp.clip((max_q - min_v) * scale, 0.0, 1.0)
    else:  # 's2': no quantile clamp; normalize still clips to [0, 1]
        lo = jnp.zeros((C,), jnp.float32)
        hi = jnp.ones((C,), jnp.float32)

    params = jnp.stack([scale, shift, lo, hi], axis=0)  # (4, C): C last for SMEM

    # Interp matrices shipped in bf16 (MXU operand dtype): half the DMA/VMEM and
    # no per-grid-step casts in the kernel.
    wy = _bilinear_matrix(S, H).astype(jnp.bfloat16)        # (S, H)
    wxt = _bilinear_matrix(S, W).T.astype(jnp.bfloat16)     # (W, S)
    ny = _nearest_matrix(S, H).astype(jnp.bfloat16)         # (S, H)
    nxt = _nearest_matrix(S, W).T.astype(jnp.bfloat16)      # (W, S)

    # Explicit VMEM budget (double-buffered blocks + temporaries, 4x margin).
    # TODO(synk): for very large rasters on v7x (64 MiB VMEM) add an H-tile grid
    # axis with an (S, W) accumulator instead of only raising the limit.
    blk_bytes = (4 * (cb * H * W + cb * S * S + H * W + S * S)
                 + 2 * (2 * S * H + 2 * W * S))
    vmem_limit = int(min(max(4 * blk_bytes, 32 * 2**20), 96 * 2**20))

    kernel = functools.partial(_fused_kernel, channels_per_block=cb)

    img_out, mask_dup = pl.pallas_call(
        kernel,
        out_shape=(
            jax.ShapeDtypeStruct((C, S, S), jnp.float32),
            jax.ShapeDtypeStruct((n_blocks, S, S), jnp.float32),
        ),
        grid_spec=pltpu.PrefetchScalarGridSpec(
            num_scalar_prefetch=1,                 # params -> SMEM
            grid=(n_blocks,),
            in_specs=[
                pl.BlockSpec((cb, H, W), lambda g, p: (g, 0, 0)),
                pl.BlockSpec((S, H), lambda g, p: (0, 0)),
                pl.BlockSpec((W, S), lambda g, p: (0, 0)),
                pl.BlockSpec((H, W), lambda g, p: (0, 0)),
                pl.BlockSpec((S, H), lambda g, p: (0, 0)),
                pl.BlockSpec((W, S), lambda g, p: (0, 0)),
            ],
            out_specs=[
                pl.BlockSpec((cb, S, S), lambda g, p: (g, 0, 0)),
                pl.BlockSpec((1, S, S), lambda g, p: (g, 0, 0)),
            ],
        ),
        compiler_params=pltpu.CompilerParams(
            dimension_semantics=("parallel",),
            vmem_limit_bytes=vmem_limit,
        ),
    )(params, image, wy, wxt, mask, ny, nxt)

    return img_out, mask_dup[0]


def seg_data_augmentation_softcon(image, mask, mean, std, *, modality: str,
                                  size: int, channels_per_block=None):
    """Eval-split forward of SegDataAugmentationSoftCon.

    image : (C, H, W) float32   mask : (H, W) float32
    returns (img_out (C, size, size), mask_out (size, size))
    """
    C = image.shape[0]
    if channels_per_block is None:
        channels_per_block = _default_channels_per_block(C)
    if channels_per_block < 1 or C % channels_per_block != 0:
        channels_per_block = 1
    return _seg_aug_impl(image, mask, mean, std, modality=modality, size=size,
                         channels_per_block=channels_per_block)


# ----------------------------------------------------------------------------
# Pure-JAX reference (original torch math) for sanity checking
# ----------------------------------------------------------------------------
def _reference(image, mask, mean, std, modality, size):
    C, H, W = image.shape
    image = image.astype(jnp.float32)
    mean = jnp.asarray(mean, jnp.float32)[:, None, None]
    std = jnp.asarray(std, jnp.float32)[:, None, None]
    if modality == "s1":
        flat = image.reshape(C, -1)
        max_q = jnp.quantile(flat, 0.99, axis=1)
        min_q = jnp.quantile(flat, 0.01, axis=1)
        image = jnp.clip(image, min_q[:, None, None], max_q[:, None, None])
    image = jnp.clip((image - (mean - 2 * std)) / (4 * std), 0.0, 1.0)
    wy = _bilinear_matrix(size, H)
    wx = _bilinear_matrix(size, W)
    img_out = jnp.einsum("sh,chw,tw->cst", wy, image, wx)
    ny = _nearest_matrix(size, H)
    nx = _nearest_matrix(size, W)
    mask_out = ny @ mask.astype(jnp.float32) @ nx.T
    return img_out, mask_out


if __name__ == "__main__":
    key = jax.random.PRNGKey(0)
    k_img, k_mask = jax.random.split(key)

    C, H, W, SIZE = 2, 16, 16, 32  # Sentinel-1 (s1): 2 bands
    # SAR-like dB values (deterministic)
    image = jax.random.normal(k_img, (C, H, W), jnp.float32) * 5.0 - 15.0
    mask = jax.random.randint(k_mask, (H, W), 0, 2).astype(jnp.float32)

    # SoftCon Sentinel-1 band stats (deterministic, hardcoded in-script)
    mean = [-12.55, -20.19]
    std = [5.26, 5.91]

    ref_img, ref_mask = _reference(image, mask, mean, std, "s1", SIZE)

    # Exercise both grid strategies (per-channel "parallel" grid and the
    # single-TC collapsed block) so both compile paths are verified on any chip.
    for cb in (1, C, None):
        img_out, mask_out = seg_data_augmentation_softcon(
            image, mask, mean, std, modality="s1", size=SIZE,
            channels_per_block=cb,
        )
        img_out = jax.block_until_ready(img_out)
        mask_out = jax.block_until_ready(mask_out)

        assert img_out.shape == (C, SIZE, SIZE) and img_out.dtype == jnp.float32
        assert mask_out.shape == (SIZE, SIZE) and mask_out.dtype == jnp.float32
        # bf16 MXU operands (f32 accumulation) => ~1e-3 abs error vs f32 reference.
        assert jnp.allclose(img_out, ref_img, atol=2e-2, rtol=2e-2)
        # nearest one-hot resize of integer labels is exact even in bf16.
        assert jnp.allclose(mask_out, ref_mask, atol=1e-5)

    print("KERNEL_OK")
</pallas_src>

<mosaic_0001>
module attributes {stable_mosaic.version = 11 : i64} {
  func.func private @main(%arg0: i32) attributes {dimension_semantics = [#tpu.dimension_semantics<core_parallel>], iteration_bounds = array<i64: 2>, tpu.core_type = #tpu.core_type<sc_scalar_subcore>, window_params = []} {
    return
  }
}

module attributes {stable_mosaic.version = 11 : i64} {
  func.func private @main(%arg0: i32) attributes {dimension_semantics = [#tpu.dimension_semantics<core_parallel>], iteration_bounds = array<i64: 2>, tpu.core_type = #tpu.core_type<sc_scalar_subcore>, window_params = []} {
    return
  }
}

module attributes {stable_mosaic.version = 11 : i64} {
  func.func @_fused_kernel(%arg0: i32, %arg1: memref<4x2xf32, #tpu.memory_space<smem>>, %arg2: memref<1x16x16xf32, #tpu.memory_space<vmem>>, %arg3: memref<32x16xbf16, #tpu.memory_space<vmem>>, %arg4: memref<16x32xbf16, #tpu.memory_space<vmem>>, %arg5: memref<16x16xf32, #tpu.memory_space<vmem>>, %arg6: memref<32x16xbf16, #tpu.memory_space<vmem>>, %arg7: memref<16x32xbf16, #tpu.memory_space<vmem>>, %arg8: memref<1x32x32xf32, #tpu.memory_space<vmem>>, %arg9: memref<1x32x32xf32, #tpu.memory_space<vmem>>) attributes {dimension_semantics = [#tpu.dimension_semantics<parallel>], iteration_bounds = array<i64: 2>, scalar_prefetch = 1 : i64, scratch_operands = 0 : i64, tpu.core_type = #tpu.core_type<tc>, window_params = [{transform_indices = @transform_0, window_bounds = array<i64: 1, 16, 16>}, {pipeline_mode = #tpu.pipeline_mode<synchronous>, transform_indices = @transform_1, window_bounds = array<i64: 32, 16>}, {pipeline_mode = #tpu.pipeline_mode<synchronous>, transform_indices = @transform_2, window_bounds = array<i64: 16, 32>}, {pipeline_mode = #tpu.pipeline_mode<synchronous>, transform_indices = @transform_3, window_bounds = array<i64: 16, 16>}, {pipeline_mode = #tpu.pipeline_mode<synchronous>, transform_indices = @transform_4, window_bounds = array<i64: 32, 16>}, {pipeline_mode = #tpu.pipeline_mode<synchronous>, transform_indices = @transform_5, window_bounds = array<i64: 16, 32>}, {transform_indices = @transform_6, window_bounds = array<i64: 1, 32, 32>}, {transform_indices = @transform_7, window_bounds = array<i64: 1, 32, 32>}]} {
    %c0 = arith.constant 0 : index
    %c0_0 = arith.constant 0 : index
    %0 = vector.load %arg3[%c0, %c0_0] : memref<32x16xbf16, #tpu.memory_space<vmem>>, vector<32x16xbf16>
    %c0_1 = arith.constant 0 : index
    %c0_2 = arith.constant 0 : index
    %1 = vector.load %arg4[%c0_1, %c0_2] : memref<16x32xbf16, #tpu.memory_space<vmem>>, vector<16x32xbf16>
    %c1_i32 = arith.constant 1 : i32
    %2 = arith.muli %arg0, %c1_i32 : i32
    %c0_i32 = arith.constant 0 : i32
    %3 = arith.addi %2, %c0_i32 : i32
    %c0_3 = arith.constant 0 : index
    %4 = arith.index_cast %3 : i32 to index
    %5 = memref.load %arg1[%c0_3, %4] : memref<4x2xf32, #tpu.memory_space<smem>>
    %c1 = arith.constant 1 : index
    %6 = arith.index_cast %3 : i32 to index
    %7 = memref.load %arg1[%c1, %6] : memref<4x2xf32, #tpu.memory_space<smem>>
    %c2 = arith.constant 2 : index
    %8 = arith.index_cast %3 : i32 to index
    %9 = memref.load %arg1[%c2, %8] : memref<4x2xf32, #tpu.memory_space<smem>>
    %c3 = arith.constant 3 : index
    %10 = arith.index_cast %3 : i32 to index
    %11 = memref.load %arg1[%c3, %10] : memref<4x2xf32, #tpu.memory_space<smem>>
    %c0_4 = arith.constant 0 : index
    %c0_5 = arith.constant 0 : index
    %c0_6 = arith.constant 0 : index
    %12 = vector.load %arg2[%c0_4, %c0_5, %c0_6] : memref<1x16x16xf32, #tpu.memory_space<vmem>>, vector<1x16x16xf32>
    %13 = vector.shape_cast %12 : vector<1x16x16xf32> to vector<16x16xf32>
    %14 = vector.broadcast %5 : f32 to vector<16x16xf32>
    %15 = arith.mulf %13, %14 : vector<16x16xf32>
    %16 = vector.broadcast %7 : f32 to vector<16x16xf32>
    %17 = arith.subf %15, %16 : vector<16x16xf32>
    %18 = vector.broadcast %9 : f32 to vector<16x16xf32>
    %19 = arith.maximumf %18, %17 : vector<16x16xf32>
    %20 = vector.broadcast %11 : f32 to vector<16x16xf32>
    %21 = arith.minimumf %20, %19 : vector<16x16xf32>
    %22 = arith.truncf %21 : vector<16x16xf32> to vector<16x16xbf16>
    %cst = arith.constant dense<0.000000e+00> : vector<32x16xf32>
    %23 = tpu.matmul %0, %22, %cst {dimension_numbers = #tpu.dot_dimension_numbers<[1], [0], [0], [1], [0, 0, 1, 1], [], []>} : vector<32x16xbf16>, vector<16x16xbf16>, vector<32x16xf32> -> vector<32x16xf32>
    %24 = arith.truncf %23 : vector<32x16xf32> to vector<32x16xbf16>
    %cst_7 = arith.constant dense<0.000000e+00> : vector<32x32xf32>
    %25 = tpu.matmul %24, %1, %cst_7 {dimension_numbers = #tpu.dot_dimension_numbers<[1], [0], [0], [1], [0, 0, 1, 1], [], []>} : vector<32x16xbf16>, vector<16x32xbf16>, vector<32x32xf32> -> vector<32x32xf32>
    %c0_8 = arith.constant 0 : index
    %c0_9 = arith.constant 0 : index
    %c0_10 = arith.constant 0 : index
    %26 = vector.load %arg8[%c0_8, %c0_9, %c0_10] : memref<1x32x32xf32, #tpu.memory_space<vmem>>, vector<1x32x32xf32>
    %27 = vector.shape_cast %26 : vector<1x32x32xf32> to vector<32x32xf32>
    %28 = vector.shape_cast %25 : vector<32x32xf32> to vector<1x32x32xf32>
    tpu.vector_store %arg8[%c0_8, %c0_9, %c0_10], %28 {strides = array<i32>} : memref<1x32x32xf32, #tpu.memory_space<vmem>>, vector<1x32x32xf32>,
    %c0_11 = arith.constant 0 : index
    %c0_12 = arith.constant 0 : index
    %29 = vector.load %arg5[%c0_11, %c0_12] : memref<16x16xf32, #tpu.memory_space<vmem>>, vector<16x16xf32>
    %30 = arith.truncf %29 : vector<16x16xf32> to vector<16x16xbf16>
    %c0_13 = arith.constant 0 : index
    %c0_14 = arith.constant 0 : index
    %31 = vector.load %arg6[%c0_13, %c0_14] : memref<32x16xbf16, #tpu.memory_space<vmem>>, vector<32x16xbf16>
    %cst_15 = arith.constant dense<0.000000e+00> : vector<32x16xf32>
    %32 = tpu.matmul %31, %30, %cst_15 {dimension_numbers = #tpu.dot_dimension_numbers<[1], [0], [0], [1], [0, 0, 1, 1], [], []>} : vector<32x16xbf16>, vector<16x16xbf16>, vector<32x16xf32> -> vector<32x16xf32>
    %33 = arith.truncf %32 : vector<32x16xf32> to vector<32x16xbf16>
    %c0_16 = arith.constant 0 : index
    %c0_17 = arith.constant 0 : index
    %34 = vector.load %arg7[%c0_16, %c0_17] : memref<16x32xbf16, #tpu.memory_space<vmem>>, vector<16x32xbf16>
    %cst_18 = arith.constant dense<0.000000e+00> : vector<32x32xf32>
    %35 = tpu.matmul %33, %34, %cst_18 {dimension_numbers = #tpu.dot_dimension_numbers<[1], [0], [0], [1], [0, 0, 1, 1], [], []>} : vector<32x16xbf16>, vector<16x32xbf16>, vector<32x32xf32> -> vector<32x32xf32>
    %c0_19 = arith.constant 0 : index
    %c0_20 = arith.constant 0 : index
    %c0_21 = arith.constant 0 : index
    %36 = vector.load %arg9[%c0_19, %c0_20, %c0_21] : memref<1x32x32xf32, #tpu.memory_space<vmem>>, vector<1x32x32xf32>
    %37 = vector.shape_cast %36 : vector<1x32x32xf32> to vector<32x32xf32>
    %38 = vector.shape_cast %35 : vector<32x32xf32> to vector<1x32x32xf32>
    tpu.vector_store %arg9[%c0_19, %c0_20, %c0_21], %38 {strides = array<i32>} : memref<1x32x32xf32, #tpu.memory_space<vmem>>, vector<1x32x32xf32>,
    return
  }
  func.func @transform_0(%arg0: i32, %arg1: memref<4x2xf32, #tpu.memory_space<smem>>) -> (i32, i32, i32) {
    %c0_i32 = arith.constant 0 : i32
    %c0_i32_0 = arith.constant 0 : i32
    %c0_i32_1 = arith.constant 0 : i32
    return %arg0, %c0_i32, %c0_i32_0 : i32, i32, i32
  }
  func.func @transform_1(%arg0: i32, %arg1: memref<4x2xf32, #tpu.memory_space<smem>>) -> (i32, i32) {
    %c0_i32 = arith.constant 0 : i32
    %c0_i32_0 = arith.constant 0 : i32
    %c0_i32_1 = arith.constant 0 : i32
    return %c0_i32, %c0_i32_0 : i32, i32
  }
  func.func @transform_2(%arg0: i32, %arg1: memref<4x2xf32, #tpu.memory_space<smem>>) -> (i32, i32) {
    %c0_i32 = arith.constant 0 : i32
    %c0_i32_0 = arith.constant 0 : i32
    %c0_i32_1 = arith.constant 0 : i32
    return %c0_i32, %c0_i32_0 : i32, i32
  }
  func.func @transform_3(%arg0: i32, %arg1: memref<4x2xf32, #tpu.memory_space<smem>>) -> (i32, i32) {
    %c0_i32 = arith.constant 0 : i32
    %c0_i32_0 = arith.constant 0 : i32
    %c0_i32_1 = arith.constant 0 : i32
    return %c0_i32, %c0_i32_0 : i32, i32
  }
  func.func @transform_4(%arg0: i32, %arg1: memref<4x2xf32, #tpu.memory_space<smem>>) -> (i32, i32) {
    %c0_i32 = arith.constant 0 : i32
    %c0_i32_0 = arith.constant 0 : i32
    %c0_i32_1 = arith.constant 0 : i32
    return %c0_i32, %c0_i32_0 : i32, i32
  }
  func.func @transform_5(%arg0: i32, %arg1: memref<4x2xf32, #tpu.memory_space<smem>>) -> (i32, i32) {
    %c0_i32 = arith.constant 0 : i32
    %c0_i32_0 = arith.constant 0 : i32
    %c0_i32_1 = arith.constant 0 : i32
    return %c0_i32, %c0_i32_0 : i32, i32
  }
  func.func @transform_6(%arg0: i32, %arg1: memref<4x2xf32, #tpu.memory_space<smem>>) -> (i32, i32, i32) {
    %c0_i32 = arith.constant 0 : i32
    %c0_i32_0 = arith.constant 0 : i32
    %c0_i32_1 = arith.constant 0 : i32
    return %arg0, %c0_i32, %c0_i32_0 : i32, i32, i32
  }
  func.func @transform_7(%arg0: i32, %arg1: memref<4x2xf32, #tpu.memory_space<smem>>) -> (i32, i32, i32) {
    %c0_i32 = arith.constant 0 : i32
    %c0_i32_0 = arith.constant 0 : i32
    %c0_i32_1 = arith.constant 0 : i32
    return %arg0, %c0_i32, %c0_i32_0 : i32, i32, i32
  }
}

</mosaic_0001>

<bundles_post_ra>
// kernel: _seg_aug_impl.1
= control target key start
LH: loop header
LB: loop body
LE: loop exit
PB: predicated region body
PF: predicated region fallthrough
CT: control target
= control target key end

     0   :  { %s1130_s0 = inlined_call_operand.vmem [shape: f32[4,2], index: 0, kind: input, shape index: {}]   ;;  %s1131_s1 = inlined_call_operand.vmem [shape: f32[2,16,16], index: 1, kind: input, shape index: {}]   ;;  %s1132_s2 = inlined_call_operand.vmem [shape: bf16[32,16], index: 2, kind: input, shape index: {}]   ;;  %s1133_s3 = inlined_call_operand.vmem [shape: bf16[16,32], index: 3, kind: input, shape index: {}]   ;;  %s1134_s4 = inlined_call_operand.vmem [shape: f32[16,16], index: 4, kind: input, shape index: {}]   ;;  %s1135_s5 = inlined_call_operand.vmem [shape: bf16[32,16], index: 5, kind: input, shape index: {}]   ;;  %s1136_s6 = inlined_call_operand.vmem [shape: bf16[16,32], index: 6, kind: input, shape index: {}]   ;;  %s1137_s7 = inlined_call_operand.hbm [shape: f32[2,32,32], index: 7, kind: output, shape index: {0}]   ;;  %s1138_s8 = inlined_call_operand.vmem [shape: f32[2,32,32], index: 8, kind: output, shape index: {1}]  }
   0x1   :  { %s14_s29 = sshll.u32 %s1130_s0, 4  ;;  %s15_s29 = int_to_ptr.vmem [resolvable:$true] %s14_s29 }
   0x2   :  { %s844_s30 = scalar_lea.vmem %s15_s29, 64  ;;  %p849_p1 = scmp.lt.s32.totalorder %s15_s29, %s15_s29 }
   0x3   :  { %p845_p0 = scmp.ne.s32.totalorder %s15_s29, %s844_s30  ;;  %p850_p2 = scmp.lt.s32.totalorder %s844_s30, %s844_s30 }
   0x5   :  { %p851_p3 = por %p850_p2, %p849_p1 }
   0x7   :  { %p852_p4 = pnand %p851_p3, %p845_p0 }
   0x9   :  { %855 = shalt.err (!%p852_p4)  }
   0xa   :  { %s920_s9 = smov [#allocation3]  }
   0xb   :  { %17 = dma.vmem_to_smem %s15_s29, 64, %s920_s9, [#allocation2] }
   0xc   :  { %898 = dma.done.wait [#allocation2], 64 }
   0xd   :  { %899 = vsyncadd [#allocation2], 4294967232 }
   0xe   :  { %19 = sfence }
   0xf   :  { %20 = vsyncpa [#allocation5], 0 }
  0x10   :  { %22 = vsyncpa [#allocation5 + $0x1], 0  ;;  %s972_s10 = smov 0   ;;  %s974_s11 = smov 0  }
  0x11   :  { %s976_s0 = smov 0   ;;  %s978_s12 = smov 0  }
  0x12 LB: > { %1143 = sst [smem:[#allocation8_spill]] %s914_s0  ;;  %s993_s13 = sadd.s32 4294967295, %s918_s12   ;;  %s918_s12 = sphi %s978_s12, %s1150_s12   ;;  %s914_s0 = sphi %s976_s0, %s1152_s0   ;;  %s910_s11 = sphi %s974_s11, %s1154_s11   ;;  %s906_s10 = sphi %s972_s10, %s1153_s10  }
  0x13   : > { %s720_s14 = sadd.s32 4294967294, %s918_s12   ;;  %s997_s15 = sadd.s32 1, %s918_s12  }
  0x14   : > { %1144 = sst [smem:[#allocation9_spill]] %s997_s15  ;;  %s166_s16 = sadd.s32 1, %s914_s0 }
  0x15   : > { %s163_s17 = ssub.s32 %s918_s12, %s997_s15  ;;  %p176_p5 = scmp.ne.s32.totalorder %s914_s0, %s910_s11 }
  0x16   : > { %p164_p6 = scmp.eq.s32.totalorder %s163_s17, 0  ;;  %p177_p7 = scmp.eq.s32.totalorder %s993_s13, 1 }
  0x17   : > { %p182_p8 = scmp.ne.s32.totalorder %s910_s11, %s906_s10  ;;  %p183_p9 = scmp.eq.s32.totalorder %s720_s14, 1 }
  0x18   : > { %s1008_s18 = scalar_select %p164_p6, %s914_s0, %s166_s16  }
  0x19   : > { %p1010_p10 = por %p177_p7, %p176_p5  ;;  %p1014_p11 = por %p183_p9, %p182_p8 }
  0x1a   : > { %1145 = sst [smem:[#allocation10_spill]] %s1008_s18  ;;  %p723_p12 = scmp.ge.s32.totalorder %s918_s12, 1 }
  0x1b   : > { %s1147_s20 = scalar_select %p1014_p11, 1, 0 }
  0x1c   : > { %p250_p13 = scmp.lt.s32.totalorder %s918_s12, 3 }
  0x1d   : > { %1148 = sst [smem:[#allocation11_spill]] %s1147_s20 }
  0x1e   : > { %p251_p0 = pnand %p723_p12, %p250_p13 }
  0x1f   : > { %p287_p1 = scmp.lt.s32.totalorder (!%p251_p0), %s993_s13, 1  ;;  %s304_s21 = sld [smem:[#allocation3 + %s993_s13]] (!%p251_p0) }
  0x20   : > { %254 = sbr.rel (%p251_p0) target bundleno = 476 (0x1dc), region = 44  ;;  %s305_s22 = sshra.s32 (!%p251_p0), %s993_s13, 7 }
  0x21   : > { %s310_s23 = sand.u32 (!%p251_p0), 127, %s993_s13  ;;  %s753_s27 = sshll.u32 (!%p251_p0), %s305_s22, 7 }
  0x22   : > { %s754_s29 = sadd.s32 (!%p251_p0), 128, %s753_s27  ;;  %s756_s18 = sadd.s32 (!%p251_p0), 256, %s753_s27 }
  0x23   : > { %s311_s16 = sadd.s32 (!%p251_p0), %s754_s29, %s310_s23  ;;  %s315_s24 = sadd.s32 (!%p251_p0), %s756_s18, %s310_s23 }
  0x24   : > { %s312_s17 = sld [smem:[#allocation3 + %s311_s16]] (!%p251_p0)  ;;  %s758_s25 = sadd.s32 (!%p251_p0), 384, %s753_s27 }
  0x25   : > { %v838_v0 = vld [vmem:[%s1132_s2] sm:$0xff]   ;;  %vm346_vm0 = vcmask 130048   ;;  %s1028_s26 = scalar_select %p287_p1, %s993_s13, 1  ;;  %v323_v3 = vstv %s304_s21  ;;  %v471_v14 = vld [vmem:[%s1134_s4 + $0x8] sm:$0xff]  ;;  %vm465_vm1 = vcmask 261120  }
  0x26   : > { %774 = vmatprep.mubr.msk.bf16.mxu0 %vm346_vm0, %v838_v0  ;;  %s316_s0 = sld [smem:[#allocation3 + %s315_s24]]  ;;  %s319_s15 = sadd.s32 %s758_s25, %s310_s23  ;;  %v470_v13 = vld [vmem:[%s1134_s4] sm:$0xff]  ;;  %v839_v19 = vld [vmem:[%s1132_s2 + $0x8] sm:$0xff]  }
  0x27   : > { %s751_s28 = sshll.u32 %s1028_s26, 4  ;;  %s320_s20 = sld [smem:[#allocation3 + %s319_s15]]  ;;  %v472_v18 = vpack.c.bf16 %v471_v14, %v470_v13  ;;  %v840_v20 = vld [vmem:[%s1135_s5] sm:$0xff]   ;;  %v841_v21 = vld [vmem:[%s1135_s5 + $0x8] sm:$0xff]  }
  0x28   : > { %s291_s14 = scalar_lea.vmem %s1131_s1, %s751_s28  ;;  %v842_v22 = vld [vmem:[%s1133_s3] sm:$0xff]   ;;  %s759_s28 = sshll.u32 %s993_s13, 9 }
  0x29   : > { %v321_v1 = vld [vmem:[%s291_s14] sm:$0xff]  ;;  %v322_v2 = vld [vmem:[%s291_s14 + $0x8] sm:$0xff]  ;;  %778 = vmatprep.subr.bf16.mxu1 %v842_v22  ;;  %s752_s29 = sshll.u32 %s1028_s26, 5  ;;  %s1073_s18 = scalar_lea.hbm %s1137_s7, %s759_s28 }
  0x2a   : > { %v324_v4 = vmul.f32 %v323_v3, %v321_v1  ;;  %v325_v5 = vmul.f32 %v323_v3, %v322_v2  ;;  %v326_v6 = vstv %s312_s17  ;;  %779 = vmatpush3.bf16.msra.mxu1 %v842_v22  ;;  %v843_v23 = vld [vmem:[%s1136_s6] sm:$0xff]   ;;  %s277_s17 = sand.u32 1, %s910_s11   ;;  %s921_s27 = smov [#allocation4]  }
  0x2b   : > { %790 = vmatprep.subr.bf16.mxu1 %v843_v23  ;;  %s724_s24 = sshll.u32 %s277_s17, 5  ;;  %s1082_s26 = scalar_lea.sflag [#allocation5], %s277_s17 }
  0x2c   : > { %v327_v7 = vsub.f32 %v324_v4, %v326_v6  ;;  %v328_v8 = vsub.f32 %v325_v5, %v326_v6  ;;  %v329_v9 = vstv %s316_s0  ;;  %s279_s25 = scalar_lea.vmem [#allocation4], %s724_s24  ;;  %s860_s30 = sshll.u32 %s921_s27, 4  ;;  %s861_s30 = int_to_ptr.vmem [resolvable:$false] %s860_s30 }
  0x2d   : > { %v332_v12 = vstv %s320_s20  ;;  %s630_s22 = sshll.u32 %s279_s25, 4  ;;  %s1079_s20 = scalar_lea.vmem %s1138_s8, %s752_s29  ;;  %s1068_s22 = int_to_ptr.vmem [resolvable:$true] %s630_s22 }
  0x2e   : > { %v330_v10 = vmax.f32 %v329_v9, %v327_v7  ;;  %v331_v11 = vmax.f32 %v329_v9, %v328_v8  ;;  %s856_s23 = scalar_lea.vmem %s1068_s22, 512  ;;  %s862_s9 = scalar_lea.vmem %s861_s30, 1024 }
  0x2f   : > { %p857_p2 = scmp.ne.s32.totalorder %s1068_s22, %s856_s23  ;;  %p863_p5 = scmp.lt.s32.totalorder %s1068_s22, %s861_s30 }
  0x30   : > { %v333_v15 = vmin.f32 %v332_v12, %v330_v10  ;;  %v334_v16 = vmin.f32 %v332_v12, %v331_v11  ;;  %p864_p6 = scmp.lt.s32.totalorder %s862_s9, %s856_s23 }
  0x31   : > { %p858_p3 = pnand %p857_p2, %p1010_p10 }
  0x32   : > { %v335_v17 = vpack.c.bf16 %v334_v16, %v333_v15  ;;  %p865_p7 = por %p864_p6, %p863_p5 }
  0x33   : > { %p859_p4 = pneg %p858_p3 }
  0x34   : > { %772 = vmatprep.subr.bf16.mxu0 %v335_v17 }
  0x35   : > { %773 = vmatpush3.bf16.msra.mxu0 %v335_v17  ;;  %p866_p8 = pnand %p865_p7, %p859_p4 }
  0x36   : > { %784 = vmatprep.subr.bf16.mxu0 %v472_v18 }
  0x38   : > { %775 = vmatmul.mubr.msk.bf16.vlgmr.msra.gmra.mxu0 %vm346_vm0, %v839_v19 }
  0x39   : > { %785 = vmatpush3.bf16.msra.mxu0 %v472_v18  ;;  %786 = vmatprep.mubr.msk.bf16.mxu0 %vm346_vm0, %v840_v20 }
  0x40   : > { %787 = vmatmul.mubr.msk.bf16.vlgmr.msra.gmra.mxu0 %vm346_vm0, %v841_v21 }
  0xf8   : > { %v776_v24 = vpop.f32.mrf.mxu0 }
  0xfa   : > { %v387_v25 = vpop.f32.mrf.mxu0 }
  0xfc   : > { %v777_v26 = vpop.f32.mrf.mxu0 }
  0xfd   : > { %v403_v29 = vpack.c.bf16 %v777_v26, %v776_v24 }
  0xfe   : > { %v390_v27 = vpop.f32.mrf.mxu0 }
  0xff   : > { %v402_v28 = vpack.c.bf16 %v390_v27, %v387_v25 }
 0x100   : > { %v788_v30 = vpop.f32.mrf.mxu0 }
 0x101   : > { %780 = vmatprep.mubr.msk.bf16.mxu1 %vm346_vm0, %v402_v28 }
 0x102   : > { %781 = vmatmul.mubr.msk.bf16.vlgmr.msra.gmra.mxu1 %vm346_vm0, %v403_v29  ;;  %v527_v31 = vpop.f32.mrf.mxu0 }
 0x103   : > { %791 = vmatpush3.bf16.msra.mxu1 %v843_v23 }
 0x104   : > { %v789_v32 = vpop.f32.mrf.mxu0 }
 0x105   : > { %v543_v35 = vpack.c.bf16 %v789_v32, %v788_v30 }
 0x106   : > { %v530_v33 = vpop.f32.mrf.mxu0 }
 0x107   : > { %v542_v34 = vpack.c.bf16 %v530_v33, %v527_v31 }
 0x109   : > { %792 = vmatprep.mubr.msk.bf16.mxu1 %vm346_vm0, %v542_v34 }
 0x10a   : > { %793 = vmatmul.mubr.msk.bf16.vlgmr.msra.gmra.mxu1 %vm346_vm0, %v543_v35 }
 0x1c2   : > { %v782_v36 = vpop.f32.mrf.mxu1 }
 0x1c3   : > { %468 = vst.msk [vmem:[%s279_s25 + $0x10] sm:$0xff] %vm465_vm1, %v782_v36 }
 0x1c4   : > { %v450_v37 = vpop.f32.mrf.mxu1 }
 0x1c5   : > { %466 = vst.msk [vmem:[%s279_s25] sm:$0xff] %vm465_vm1, %v450_v37 }
 0x1c6   : > { %v783_v38 = vpop.f32.mrf.mxu1 }
 0x1c7   : > { %469 = vst.msk [vmem:[%s279_s25 + $0x18] sm:$0xff] %vm465_vm1, %v783_v38 }
 0x1c8   : > { %v453_v39 = vpop.f32.mrf.mxu1 }
 0x1c9   : > { %467 = vst.msk [vmem:[%s279_s25 + $0x8] sm:$0xff] %vm465_vm1, %v453_v39 }
 0x1ca   : > { %v794_v40 = vpop.f32.mrf.mxu1 }
 0x1cb   : > { %869 = shalt.err (!%p866_p8)
}
 0x1cc   : > { %s870_s14 = scalar_lea.hbm %s1073_s18, 512  ;;  %s874_s24 = scalar_lea.hbm %s1137_s7, 1024 }
 0x1cd   : > { %p871_p9 = scmp.ne.s32.totalorder %s1073_s18, %s870_s14  ;;  %p875_p0 = scmp.lt.s32.totalorder %s1073_s18, %s1137_s7 }
 0x1ce   : > { %p876_p1 = scmp.lt.s32.totalorder %s874_s24, %s870_s14 }
 0x1cf   : > { %p872_p12 = pnand %p871_p9, %p1010_p10 }
 0x1d0   : > { %p877_p2 = por %p876_p1, %p875_p0 }
 0x1d1   : > { %p873_p13 = pneg %p872_p12 }
 0x1d3   : > { %p878_p3 = pnand %p877_p2, %p873_p13 }
 0x1d5   : > { %881 = shalt.err (!%p878_p3)
}
 0x1d6   : > { %s922_s29 = smov 128   ;;  %s923_s21 = smov 8   ;;  %609 = vst.msk [vmem:[%s1079_s20 + $0x10] sm:$0xff] %vm465_vm1, %v794_v40  ;;  %v592_v41 = vpop.f32.mrf.mxu1 }
 0x1d7   : > { %796 = dma.vmem_to_hbm [thread:$0]  (%p1010_p10), %s1068_s22, 512, %s1073_s18, %s1082_s26, %s922_s29, %s922_s29, %s923_s21  }
 0x1d8   : > { %607 = vst.msk [vmem:[%s1079_s20] sm:$0xff] %vm465_vm1, %v592_v41  ;;  %v795_v42 = vpop.f32.mrf.mxu1 }
 0x1d9   : > { %610 = vst.msk [vmem:[%s1079_s20 + $0x18] sm:$0xff] %vm465_vm1, %v795_v42 }
 0x1da   : > { %v595_v43 = vpop.f32.mrf.mxu1 }
 0x1db   : > { %608 = vst.msk [vmem:[%s1079_s20 + $0x8] sm:$0xff] %vm465_vm1, %v595_v43 }
 0x1dc PF: > { %p802_p4 = scmp.ge.s32.totalorder %s918_s12, 2  ;;  %s648_s0 = sand.u32 1, %s906_s10  }
 0x1dd   : > { %s649_s19 = scalar_lea.sflag [#allocation5], %s648_s0 }
 0x1de   : > { %p799_p5 = pnand %p802_p4, %p1014_p11 }
 0x1e0   : > { %p800_p10 = pneg %p799_p5 }
 0x1e2   : > { %901 = dma.done.wait (%p800_p10), %s649_s19, 512  }
 0x1e3   : > { %903 = vsyncadd (%p800_p10), %s649_s19, 4294966784  ;;  %s1150_s12 = sld [smem:[#allocation9_spill]]  ;;  %s1153_s10 = smov %s910_s11 }
 0x1e4   : > { %s1151_s22 = sld [smem:[#allocation8_spill]] }
 0x1e5   : > { %s1152_s0 = sld [smem:[#allocation10_spill]] }
 0x1e9   : > { %p25_p6 = scmp.ge.s32.totalorder %s1150_s12, 4  }
 0x1ea   : > { %s1154_s11 = smov %s1151_s22 }
 0x1eb   :  { %27 = sbr.rel (!%p25_p6) target bundleno = 18 (0x12), region = 91 }
 0x1f0   :  { %662 = vsyncpa [#allocation5], 1 }
 0x1f1   :  { %664 = vsyncpa [#allocation5 + $0x1], 1 }

</bundles_post_ra>
